<compile_context>
chip_gen: v7x
topology: tpu7x:2x2x1
jax: 0.10.0
libtpu: 0.0.40
codegen_flags: <defaults>
</compile_context>

<pallas_src>
import functools

import jax
import jax.numpy as jnp
from jax.experimental import pallas as pl
from jax.experimental.pallas import tpu as pltpu

EPS = 1e-5


def _cell_zero_kernel(h_ref, w_ref, p_ref, o_ref, *, n_ops, feat):
    h = h_ref[...]                         # [N, F]        fp32
    w = w_ref[...]                         # [F, KF_pad]   fp32 (zero-padded lanes)
    scale_a = p_ref[0:1, :]                # [1, KF_pad]   alpha_k * gamma_k
    shift_a = p_ref[1:2, :]                # [1, KF_pad]   alpha_k * beta_k

    # One fused, lane-dense MXU matmul covering all K candidate ops.
    z = jnp.dot(h, w, preferred_element_type=jnp.float32)       # [N, KF_pad]

    # BatchNorm1d training-mode batch stats in a single pass over z:
    # biased variance via E[x^2] - E[x]^2 (clamped for fp safety).
    n_inv = 1.0 / h.shape[0]
    mean = jnp.sum(z, axis=0, keepdims=True) * n_inv             # [1, KF_pad]
    ex2 = jnp.sum(z * z, axis=0, keepdims=True) * n_inv          # [1, KF_pad]
    var = jnp.maximum(ex2 - mean * mean, 0.0)

    # Fold alpha/gamma/rsqrt into one scale and alpha*beta into one shift.
    # (Valid to push alpha through ReLU because softmax weights are >= 0.)
    scale = scale_a * jax.lax.rsqrt(var + EPS)
    y = jnp.maximum((z - mean) * scale + shift_a, 0.0)           # [N, KF_pad]

    # Reduce the K per-op 32-lane slices of the fused slab (padding lanes are
    # identically zero and never read).
    acc = y[:, 0:feat]
    for k in range(1, n_ops):
        acc = acc + y[:, k * feat:(k + 1) * feat]
    o_ref[...] = acc


def cell_zero_forward(alpha, h, W, gamma, beta):
    """alpha:[K] h:[N,F] W:[K,F,F] gamma,beta:[K,F] -> [N,F] fp32."""
    K, F, _ = W.shape
    N = h.shape[0]
    KF = K * F
    KF_pad = ((KF + 127) // 128) * 128        # lane-dense fused width

    # Fuse per-op weights into a single [F, KF_pad] operand:
    #   W_all[:, k*F:(k+1)*F] = W[k], remaining lanes zero.
    w_all = jnp.transpose(W.astype(jnp.float32), (1, 0, 2)).reshape(F, KF)
    w_all = jnp.pad(w_all, ((0, 0), (0, KF_pad - KF)))

    # Fold the architecture weights into the BN affine params host-side and
    # pack them into one small operand: row 0 = alpha*gamma, row 1 = alpha*beta.
    ag = (alpha[:, None] * gamma).astype(jnp.float32).reshape(1, KF)
    ab = (alpha[:, None] * beta).astype(jnp.float32).reshape(1, KF)
    params = jnp.pad(jnp.concatenate([ag, ab], axis=0),
                     ((0, 0), (0, KF_pad - KF)))

    kernel = functools.partial(_cell_zero_kernel, n_ops=K, feat=F)
    return pl.pallas_call(
        kernel,
        out_shape=jax.ShapeDtypeStruct((N, F), jnp.float32),
        in_specs=[
            pl.BlockSpec(memory_space=pltpu.MemorySpace.VMEM),   # h       [N, F]
            pl.BlockSpec(memory_space=pltpu.MemorySpace.VMEM),   # W_all   [F, KF_pad]
            pl.BlockSpec(memory_space=pltpu.MemorySpace.VMEM),   # params  [2, KF_pad]
        ],
        out_specs=pl.BlockSpec(memory_space=pltpu.MemorySpace.VMEM),
    )(h.astype(jnp.float32), w_all, params)


def cell_zero_ref(alpha, h, W, gamma, beta):
    """Pure-JAX reference (per-op loop, two-pass BN stats)."""
    out = jnp.zeros((h.shape[0], h.shape[1]), jnp.float32)
    for k in range(W.shape[0]):
        z = h.astype(jnp.float32) @ W[k].astype(jnp.float32)
        mean = jnp.mean(z, axis=0, keepdims=True)
        var = jnp.mean((z - mean) ** 2, axis=0, keepdims=True)
        zn = (z - mean) / jnp.sqrt(var + EPS) * gamma[k] + beta[k]
        out = out + alpha[k] * jnp.maximum(zn, 0.0)
    return out


if __name__ == "__main__":
    # Small shapes implied by the module: nodes N, feature_dim F, K PRE_OPS.
    N, F, K = 16, 32, 3

    key = jax.random.PRNGKey(0)
    k_h, k_w, k_g, k_be, k_a, k_hr = jax.random.split(key, 6)

    h = jax.random.normal(k_h, (N, F), jnp.float32)            # node features
    hr = jax.random.normal(k_hr, (N, F), jnp.float32)          # residual (unused, see TODO)
    W = jax.random.normal(k_w, (K, F, F), jnp.float32) * 0.1   # per-op linear weights
    gamma = 1.0 + 0.1 * jax.random.normal(k_g, (K, F), jnp.float32)  # BN affine
    beta = 0.1 * jax.random.normal(k_be, (K, F), jnp.float32)
    # weights[0]: architecture weights over the K candidate ops (softmaxed => >= 0)
    alpha = jax.nn.softmax(jax.random.normal(k_a, (K,), jnp.float32))

    out = cell_zero_forward(alpha, h, W, gamma, beta)
    out = jax.block_until_ready(out)

    ref = cell_zero_ref(alpha, h, W, gamma, beta)
    assert out.shape == (N, F)
    assert jnp.allclose(out, ref, atol=2e-4, rtol=2e-4), "mismatch vs JAX reference"

    print("KERNEL_OK")
</pallas_src>

<mosaic_0001>
module attributes {stable_mosaic.version = 11 : i64} {
  func.func @_cell_zero_kernel(%arg0: memref<16x32xf32, #tpu.memory_space<vmem>>, %arg1: memref<32x128xf32, #tpu.memory_space<vmem>>, %arg2: memref<2x128xf32, #tpu.memory_space<vmem>>, %arg3: memref<16x32xf32, #tpu.memory_space<vmem>>) attributes {dimension_semantics = [], scalar_prefetch = 0 : i64, scratch_operands = 0 : i64, tpu.core_type = #tpu.core_type<tc>} {
    %c0 = arith.constant 0 : index
    %c0_0 = arith.constant 0 : index
    %0 = vector.load %arg0[%c0, %c0_0] : memref<16x32xf32, #tpu.memory_space<vmem>>, vector<16x32xf32>
    %c0_1 = arith.constant 0 : index
    %c0_2 = arith.constant 0 : index
    %1 = vector.load %arg1[%c0_1, %c0_2] : memref<32x128xf32, #tpu.memory_space<vmem>>, vector<32x128xf32>
    %c0_3 = arith.constant 0 : index
    %c0_4 = arith.constant 0 : index
    %2 = vector.load %arg2[%c0_3, %c0_4] : memref<2x128xf32, #tpu.memory_space<vmem>>, vector<1x128xf32>
    %c1 = arith.constant 1 : index
    %c0_5 = arith.constant 0 : index
    %3 = vector.load %arg2[%c1, %c0_5] : memref<2x128xf32, #tpu.memory_space<vmem>>, vector<1x128xf32>
    %cst = arith.constant dense<0.000000e+00> : vector<16x128xf32>
    %4 = tpu.matmul %0, %1, %cst {dimension_numbers = #tpu.dot_dimension_numbers<[1], [0], [0], [1], [0, 0, 1, 1], [], []>} : vector<16x32xf32>, vector<32x128xf32>, vector<16x128xf32> -> vector<16x128xf32>
    %cst_6 = arith.constant dense<0.000000e+00> : vector<128xf32>
    %5 = vector.multi_reduction <add>, %4, %cst_6 [0] : vector<16x128xf32> to vector<128xf32>
    %6 = vector.shape_cast %5 : vector<128xf32> to vector<1x128xf32>
    %cst_7 = arith.constant 6.250000e-02 : f32
    %7 = vector.broadcast %cst_7 : f32 to vector<1x128xf32>
    %8 = arith.mulf %6, %7 : vector<1x128xf32>
    %9 = arith.mulf %4, %4 : vector<16x128xf32>
    %cst_8 = arith.constant dense<0.000000e+00> : vector<128xf32>
    %10 = vector.multi_reduction <add>, %9, %cst_8 [0] : vector<16x128xf32> to vector<128xf32>
    %11 = vector.shape_cast %10 : vector<128xf32> to vector<1x128xf32>
    %cst_9 = arith.constant 6.250000e-02 : f32
    %12 = vector.broadcast %cst_9 : f32 to vector<1x128xf32>
    %13 = arith.mulf %11, %12 : vector<1x128xf32>
    %14 = arith.mulf %8, %8 : vector<1x128xf32>
    %15 = arith.subf %13, %14 : vector<1x128xf32>
    %cst_10 = arith.constant 0.000000e+00 : f32
    %16 = vector.broadcast %cst_10 : f32 to vector<1x128xf32>
    %17 = arith.maximumf %15, %16 : vector<1x128xf32>
    %cst_11 = arith.constant 9.99999974E-6 : f32
    %18 = vector.broadcast %cst_11 : f32 to vector<1x128xf32>
    %19 = arith.addf %17, %18 : vector<1x128xf32>
    %20 = math.rsqrt %19 : vector<1x128xf32>
    %21 = arith.mulf %2, %20 : vector<1x128xf32>
    %22 = vector.broadcast %8 : vector<1x128xf32> to vector<16x128xf32>
    %23 = arith.subf %4, %22 : vector<16x128xf32>
    %24 = vector.broadcast %21 : vector<1x128xf32> to vector<16x128xf32>
    %25 = arith.mulf %23, %24 : vector<16x128xf32>
    %26 = vector.broadcast %3 : vector<1x128xf32> to vector<16x128xf32>
    %27 = arith.addf %25, %26 : vector<16x128xf32>
    %cst_12 = arith.constant 0.000000e+00 : f32
    %28 = vector.broadcast %cst_12 : f32 to vector<16x128xf32>
    %29 = arith.maximumf %27, %28 : vector<16x128xf32>
    %30 = vector.extract_strided_slice %29 {offsets = [0, 0], sizes = [16, 32], strides = [1, 1]} : vector<16x128xf32> to vector<16x32xf32>
    %31 = vector.extract_strided_slice %29 {offsets = [0, 32], sizes = [16, 32], strides = [1, 1]} : vector<16x128xf32> to vector<16x32xf32>
    %32 = arith.addf %30, %31 : vector<16x32xf32>
    %33 = vector.extract_strided_slice %29 {offsets = [0, 64], sizes = [16, 32], strides = [1, 1]} : vector<16x128xf32> to vector<16x32xf32>
    %34 = arith.addf %32, %33 : vector<16x32xf32>
    %c0_13 = arith.constant 0 : index
    %c0_14 = arith.constant 0 : index
    %35 = vector.load %arg3[%c0_13, %c0_14] : memref<16x32xf32, #tpu.memory_space<vmem>>, vector<16x32xf32>
    tpu.vector_store %arg3[%c0_13, %c0_14], %34 {strides = array<i32>} : memref<16x32xf32, #tpu.memory_space<vmem>>, vector<16x32xf32>,
    return
  }
}

</mosaic_0001>

<bundles_post_ra>
// kernel: tpu_custom_call.1
= control target key start
LH: loop header
LB: loop body
LE: loop exit
PB: predicated region body
PF: predicated region fallthrough
CT: control target
= control target key end

     0   :  { %8 = vsyncpa [#allocation3], 0  ;;  %s402_s0 = inlined_call_operand.hbm [shape: f32[16,32], index: 0, kind: input, shape index: {}]   ;;  %s403_s1 = inlined_call_operand.hbm [shape: f32[32,128], index: 1, kind: input, shape index: {}]   ;;  %s404_s2 = inlined_call_operand.vmem [shape: f32[2,128], index: 2, kind: input, shape index: {}]   ;;  %s405_s3 = inlined_call_operand.hbm [shape: f32[16,32], index: 3, kind: output, shape index: {}]  }
   0x1   :  { %9 = vsyncpa [#allocation6], 0 }
   0x2   :  { %10 = vsyncpa [#allocation4], 0  ;;  %s320_s12 = smov [#allocation2]   ;;  %s248_s16 = scalar_lea.hbm %s402_s0, 256 }
   0x3   :  { %s16_s13 = sshll.u32 %s320_s12, 4  ;;  %p249_p0 = scmp.ne.s32.totalorder %s402_s0, %s248_s16  ;;  %s17_s13 = int_to_ptr.vmem [resolvable:$true] %s16_s13 }
   0x4   :  { %p252_p1 = scmp.lt.u32.totalorder %s248_s16, %s402_s0 }
   0x6   :  { %p254_p2 = pnand %p252_p1, %p249_p0 }
   0x8   :  { %257 = shalt.err (!%p254_p2)
}
   0x9   :  { %s258_s21 = scalar_lea.vmem %s17_s13, 256  ;;  %p263_p4 = scmp.lt.s32.totalorder %s17_s13, %s17_s13 }
   0xa   :  { %p259_p3 = scmp.ne.s32.totalorder %s17_s13, %s258_s21  ;;  %p264_p5 = scmp.lt.s32.totalorder %s258_s21, %s258_s21 }
   0xc   :  { %p265_p6 = por %p264_p5, %p263_p4 }
   0xe   :  { %p266_p7 = pnand %p265_p6, %p259_p3 }
  0x10   :  { %269 = shalt.err (!%p266_p7)
}
  0x11   :  { %s321_s22 = smov 128   ;;  %s322_s23 = smov 8  }
  0x12   :  { %22 = dma.hbm_to_vmem [thread:$0]  %s402_s0, 256, %s17_s13, [#allocation3], %s321_s22, %s321_s22, %s322_s23  }
  0x13   :  { %s323_s26 = smov [#allocation5]   ;;  %s270_s30 = scalar_lea.hbm %s403_s1, 512 }
  0x14   :  { %s28_s27 = sshll.u32 %s323_s26, 4  ;;  %p271_p8 = scmp.ne.s32.totalorder %s403_s1, %s270_s30  ;;  %s29_s27 = int_to_ptr.vmem [resolvable:$true] %s28_s27 }
  0x15   :  { %p274_p9 = scmp.lt.u32.totalorder %s270_s30, %s403_s1 }
  0x17   :  { %p276_p10 = pnand %p274_p9, %p271_p8 }
  0x19   :  { %279 = shalt.err (!%p276_p10)
}
  0x1a   :  { %s280_s8 = scalar_lea.vmem %s29_s27, 512  ;;  %p285_p12 = scmp.lt.s32.totalorder %s29_s27, %s29_s27 }
  0x1b   :  { %p281_p11 = scmp.ne.s32.totalorder %s29_s27, %s280_s8  ;;  %p286_p13 = scmp.lt.s32.totalorder %s280_s8, %s280_s8 }
  0x1d   :  { %p287_p0 = por %p286_p13, %p285_p12 }
  0x1f   :  { %p288_p1 = pnand %p287_p0, %p281_p11 }
  0x21   :  { %291 = shalt.err (!%p288_p1)
}
  0x22   :  { %34 = dma.hbm_to_vmem [thread:$0]  %s403_s1, 512, %s29_s27, [#allocation6], %s321_s22, %s321_s22, %s322_s23  }
  0x23   :  { %314 = dma.done.wait [#allocation3], 256  }
  0x24   :  { %315 = vsyncadd [#allocation3], 4294967040 }
  0x25   :  { %316 = dma.done.wait [#allocation6], 512  }
  0x26   :  { %317 = vsyncadd [#allocation6], 4294966784  ;;  %vm51_vm0 = vcmask 261120   ;;  %v45_v0 = vld [vmem:[#allocation5] sm:$0xff]  ;;  %v46_v1 = vld [vmem:[#allocation5 + $0x8] sm:$0xff]  ;;  %v159_v34 = vlaneseq  ;;  %s324_s13 = smov 64  }
  0x27   :  { %v47_v2 = vld [vmem:[#allocation5 + $0x10] sm:$0xff]  ;;  %v231_v3 = vpack.c.bf16 %v46_v1, %v45_v0  ;;  %v48_v4 = vld [vmem:[#allocation5 + $0x18] sm:$0xff]  ;;  %s325_s14 = smov 96   ;;  %s326_s15 = smov [#allocation7]  }
  0x28   :  { %v43_v5 = vld [vmem:[#allocation2] sm:$0xff]  ;;  %v235_v6 = vpack.c.bf16 %v48_v4, %v47_v2  ;;  %v44_v7 = vld [vmem:[#allocation2 + $0x8] sm:$0xff]  ;;  %v160_v35 = vshrl.u32 %v159_v34, 7  ;;  %s198_s16 = sshll.u32 %s326_s15, 4  ;;  %s199_s16 = int_to_ptr.vmem [resolvable:$true] %s198_s16 }
  0x29   :  { %228 = vmatprep.mubr.msk.f32.mxu0 %vm51_vm0, %v43_v5  ;;  %232 = vmatprep.subr.bf16.mxu0 %v231_v3  ;;  %v49_v36 = vld [vmem:[%s404_s2] sm:$0x1]  ;;  %v213_v41 = vld [vmem:[%s404_s2 + $0x1] ss:$0 sm:$0xff]  ;;  %s292_s2 = scalar_lea.vmem %s199_s16, 256  ;;  %p297_p3 = scmp.lt.s32.totalorder %s199_s16, %s199_s16 }
  0x2a   :  { %234 = vmatpush3.bf16.msra.mxu0 %v231_v3  ;;  %v161_v37 = vsub.s32 0, %v160_v35  ;;  %p293_p2 = scmp.ne.s32.totalorder %s199_s16, %s292_s2  ;;  %p298_p4 = scmp.lt.s32.totalorder %s292_s2, %s292_s2 }
  0x2b   :  { %236 = vmatprep.subr.bf16.mxu0 %v235_v6 }
  0x2c   :  { %p299_p5 = por %p298_p4, %p297_p3 }
  0x2e   :  { %238 = vmatpush3.bf16.msra.mxu0 %v235_v6  ;;  %p300_p6 = pnand %p299_p5, %p293_p2 }
  0x31   :  { %229 = vmatmul.mubr.msk.f32.vlgmr.msra.gmra.mrb[0].mxu0 %vm51_vm0, %v44_v7 }
 0x104   :  { %v230_v8 = vpop.f32.mrb[0].mxu0 }
 0x105   :  { %v142_v9 = vmul.f32 %v230_v8, %v230_v8  ;;  %v124_v10 = vpop.f32.mrb[1].mxu0 }
 0x106   :  { %v133_v11 = vadd.f32 %v230_v8, %v124_v10  ;;  %v141_v12 = vmul.f32 %v124_v10, %v124_v10 }
 0x108   :  { %v134_v13 = vrot.slane %v133_v11, 4  ;;  %v143_v14 = vadd.f32 %v142_v9, %v141_v12 }
 0x10a   :  { %v135_v15 = vadd.f32 %v134_v13, %v133_v11  ;;  %v144_v16 = vrot.slane %v143_v14, 4 }
 0x10c   :  { %v136_v17 = vrot.slane %v135_v15, 2  ;;  %v145_v18 = vadd.f32 %v144_v16, %v143_v14 }
 0x10e   :  { %v137_v19 = vadd.f32 %v136_v17, %v135_v15  ;;  %v146_v20 = vrot.slane %v145_v18, 2 }
 0x110   :  { %v138_v21 = vrot.slane %v137_v19, 1  ;;  %v147_v22 = vadd.f32 %v146_v20, %v145_v18 }
 0x112   :  { %v139_v23 = vadd.f32 %v138_v21, %v137_v19  ;;  %v148_v24 = vrot.slane %v147_v22, 1 }
 0x114   :  { %v140_v25 = vmul.f32 0.0625, %v139_v23  ;;  %v149_v26 = vadd.f32 %v148_v24, %v147_v22 }
 0x116   :  { %v150_v27 = vmul.f32 0.0625, %v149_v26  ;;  %v151_v28 = vmul.f32 %v140_v25, %v140_v25  ;;  %v157_v29 = vsub.f32 %v124_v10, %v140_v25  ;;  %v158_v30 = vsub.f32 %v230_v8, %v140_v25 }
 0x118   :  { %v152_v31 = vsub.f32 %v150_v27, %v151_v28 }
 0x11a   :  { %v153_v32 = vmax.f32 %v152_v31, 0.0 }
 0x11c   :  { %v154_v33 = vadd.f32 1e-05, %v153_v32 }
 0x11e   :  { %246 = vrsqrt.f32 %v154_v33 }
 0x128   :  { %v247_v38 = vpop.eup %246 }
 0x129   :  { %v156_v39 = vmul.f32 %v247_v38, %v49_v36 }
 0x12b   :  { %v162_v40 = vrot.slane %v156_v39, %v161_v37 }
 0x12d   :  { %v163_v42 = vmul.f32 %v162_v40, %v157_v29  ;;  %v164_v43 = vmul.f32 %v162_v40, %v158_v30 }
 0x12f   :  { %v169_v44 = vadd.f32 %v213_v41, %v163_v42  ;;  %v170_v46 = vadd.f32 %v213_v41, %v164_v43 }
 0x131   :  { %v171_v45 = vmax.f32 %v169_v44, 0.0  ;;  %v172_v47 = vmax.f32 %v170_v46, 0.0 }
 0x133   :  { %183 = vrot.lane.b32.xlu1 %v171_v45, %s324_s13  ;;  %175 = vrot.lane.b32.xlu0 %v171_v45, %s325_s14 }
 0x137   :  { %185 = vrot.lane.b32.xlu1 %v172_v47, %s324_s13  ;;  %177 = vrot.lane.b32.xlu0 %v172_v47, %s325_s14 }
 0x1a5   :  { %v184_v48 = vpop.permute.xlu1 %183  ;;  %v176_v49 = vpop.permute.xlu0 %175 }
 0x1a6   :  { %v181_v50 = vadd.f32 %v176_v49, %v171_v45 }
 0x1a8   :  { %v189_v51 = vadd.f32 %v184_v48, %v181_v50 }
 0x1a9   :  { %v178_v52 = vpop.permute.xlu0 %177  ;;  %v186_v54 = vpop.permute.xlu1 %185 }
 0x1aa   :  { %191 = vst.msk [vmem:[#allocation7] sm:$0xff] %vm51_vm0, %v189_v51  ;;  %v182_v53 = vadd.f32 %v178_v52, %v172_v47 }
 0x1ac   :  { %v190_v55 = vadd.f32 %v186_v54, %v182_v53 }
 0x1ae   :  { %192 = vst.msk [vmem:[#allocation7 + $0x8] sm:$0xff] %vm51_vm0, %v190_v55 }
 0x1af   :  { %303 = shalt.err (!%p300_p6)
}
 0x1b0   :  { %s304_s19 = scalar_lea.hbm %s405_s3, 256 }
 0x1b1   :  { %p305_p7 = scmp.ne.s32.totalorder %s405_s3, %s304_s19  ;;  %p308_p8 = scmp.lt.u32.totalorder %s304_s19, %s405_s3 }
 0x1b3   :  { %p310_p9 = pnand %p308_p8, %p305_p7 }
 0x1b5   :  { %313 = shalt.err (!%p310_p9)
}
 0x1b6   :  { %204 = dma.vmem_to_hbm [thread:$0]  %s199_s16, 256, %s405_s3, [#allocation4], %s321_s22, %s321_s22, %s322_s23  }
 0x1b7   :  { %318 = dma.done.wait [#allocation4], 256  }
 0x1b8   :  { %319 = vsyncadd [#allocation4], 4294967040 }
 0x1b9   :  { %208 = vsyncpa [#allocation3], 1 }
 0x1ba   :  { %209 = vsyncpa [#allocation6], 1 }
 0x1bb   :  { %210 = vsyncpa [#allocation4], 1 }

</bundles_post_ra>
